<compile_context>
chip_gen: v6e
topology: v6e:2x2x1
jax: 0.10.0
libtpu: 0.0.40
codegen_flags: <defaults>
</compile_context>

<pallas_src>
import jax
import jax.numpy as jnp
import numpy as np
from jax.experimental import pallas as pl
from jax.experimental.pallas import tpu as pltpu

EMBED_DIM = 32        # torch module uses 256; small synthetic size for the demo
HIDDEN = 32
NUM_LAYERS = 2
NUM_CLASSES = 13
BATCH = 4

C_PAD = 128           # logits padded to one full lane width (unmasked stores)


def _round_up(x, m):
    return -(-x // m) * m


# --------------------------------------------------------------------------- #
# Kernel: one invocation == whole sequence. Weights VMEM-resident, recurrence
# runs in an inner fori_loop with the state carried as loop values.
# --------------------------------------------------------------------------- #
def _digit_lstm_kernel(x_proj_ref, state_in_ref, w_hh0_ref, w_ih1_ref, w_hh1_ref,
                       b1_ref, w_fc_ref, b_fc_ref, logits_ref, state_out_ref,
                       h1_seq_sc):
    TB, G = x_proj_ref.shape           # (T*B, 4H), layer-0 gate pre-activation
    H = G // 4
    B = state_in_ref.shape[1]          # padded batch (multiple of 8 sublanes)
    T = TB // B

    # Loop-invariant loads / broadcasts hoisted above the recurrence.
    w_hh0 = w_hh0_ref[...]             # (H, 4H) bf16
    w_ih1 = w_ih1_ref[...]             # (H, 4H) bf16
    w_hh1 = w_hh1_ref[...]             # (H, 4H) bf16
    b1 = jnp.broadcast_to(b1_ref[...], (B, G))       # hoisted bias broadcast

    init = (state_in_ref[0], state_in_ref[1],        # h0, h1
            state_in_ref[2], state_in_ref[3])        # c0, c1

    def cell_tail(gates, c):
        # torch gate order [i | f | g | o]; tanh only on the g slice (opt #5)
        sg = jax.nn.sigmoid(gates)                   # (B, 4H) full-tile sigmoid
        g = jnp.tanh(gates[:, 2 * H:3 * H])
        c_new = sg[:, H:2 * H] * c + sg[:, 0:H] * g
        h_new = sg[:, 3 * H:4 * H] * jnp.tanh(c_new)
        return h_new, c_new

    def step(t, carry):
        h0, h1, c0, c1 = carry
        row = pl.multiple_of(t * B, 8)
        # layer 0: x@W_ih0 + b_ih0 + b_hh0 precomputed (hoisted out of the loop)
        gates0 = x_proj_ref[pl.ds(row, B), :] + jnp.dot(
            h0.astype(jnp.bfloat16), w_hh0, preferred_element_type=jnp.float32)
        h0n, c0n = cell_tail(gates0, c0)
        # layer 1: two independent bf16 matmuls (no lane concat), f32 accumulate
        gates1 = (jnp.dot(h0n.astype(jnp.bfloat16), w_ih1,
                          preferred_element_type=jnp.float32)
                  + jnp.dot(h1.astype(jnp.bfloat16), w_hh1,
                            preferred_element_type=jnp.float32)
                  + b1)
        h1n, c1n = cell_tail(gates1, c1)
        h1_seq_sc[pl.ds(row, B), :] = h1n            # collect h1 for the FC epilogue
        return h0n, h1n, c0n, c1n

    h0f, h1f, c0f, c1f = jax.lax.fori_loop(0, T, step, init, unroll=(T <= 16))

    # final packed state: sublane-major direct writes (no lane concat)
    state_out_ref[0] = h0f
    state_out_ref[1] = h1f
    state_out_ref[2] = c0f
    state_out_ref[3] = c1f

    # FC epilogue: ONE (T*B, H)@(H, 128) matmul + bias, lane-dense unmasked store
    logits_ref[...] = (jnp.dot(h1_seq_sc[...].astype(jnp.bfloat16), w_fc_ref[...],
                               preferred_element_type=jnp.float32)
                       + b_fc_ref[...])


# --------------------------------------------------------------------------- #
# One-time parameter preparation (layout / dtype plumbing hoisted out of the
# per-call wrapper).
# --------------------------------------------------------------------------- #
def prepare_params(params):
    H, C, G = HIDDEN, NUM_CLASSES, 4 * HIDDEN
    # Fold the layer-0 input projection + both layer-0 biases into the
    # embedding table: emb_proj[tok] = emb[tok] @ W_ih0^T + b_ih0 + b_hh0.
    emb_proj = (params["embedding"] @ params["w_ih0"].T
                + params["b_ih0"] + params["b_hh0"]).astype(jnp.float32)
    w_fc_pad = jnp.zeros((H, C_PAD), jnp.bfloat16).at[:, :C].set(
        params["w_fc"].T.astype(jnp.bfloat16))
    b_fc_pad = jnp.zeros((1, C_PAD), jnp.float32).at[:, :C].set(params["b_fc"])
    return {
        "emb_proj": emb_proj,                                    # (num_classes, 4H) f32
        "w_hh0": params["w_hh0"].T.astype(jnp.bfloat16),         # (H, 4H) bf16 MXU operand
        "w_ih1": params["w_ih1"].T.astype(jnp.bfloat16),         # (H, 4H) bf16
        "w_hh1": params["w_hh1"].T.astype(jnp.bfloat16),         # (H, 4H) bf16
        "b1": (params["b_ih1"] + params["b_hh1"]).reshape(1, G).astype(jnp.float32),
        "w_fc_pad": w_fc_pad,                                    # (H, 128) bf16
        "b_fc_pad": b_fc_pad,                                    # (1, 128) f32
    }


# --------------------------------------------------------------------------- #
# Forward wrapper. x_idx may be (B,) (seq_len=1, exact DigitLSTM.forward) or
# (B, T) to run T recurrent steps inside one kernel launch.
# --------------------------------------------------------------------------- #
@jax.jit
def digit_lstm_forward(x_idx, hidden, cell, prep):
    x_seq = x_idx if x_idx.ndim == 2 else x_idx[:, None]        # (B, T)
    B, T = x_seq.shape
    H, G, C = HIDDEN, 4 * HIDDEN, NUM_CLASSES
    Bp = _round_up(B, 8)                                        # full sublane width

    # pad batch to 8 sublanes (unmasked stores); pad tokens with id 0 (harmless)
    x_pad = jnp.pad(x_seq, ((0, Bp - B), (0, 0)))
    hid_pad = jnp.pad(hidden, ((0, 0), (0, Bp - B), (0, 0)))
    cell_pad = jnp.pad(cell, ((0, 0), (0, Bp - B), (0, 0)))

    # glue: gather the *projected* embedding table -> layer-0 gate pre-activation
    x_proj = jnp.take(prep["emb_proj"], x_pad.T, axis=0).reshape(T * Bp, G)

    # packed recurrent state [h0 | h1 | c0 | c1] along the leading (sublane) axis
    state_in = jnp.concatenate([hid_pad, cell_pad], axis=0)     # (4, Bp, H)

    flops = T * (2 * Bp * H * G          # layer-0 recurrent matmul
                 + 2 * 2 * Bp * H * G)   # layer-1 two matmuls
    flops += 2 * T * Bp * H * C_PAD      # fc epilogue
    transcendentals = T * Bp * 2 * (G + 2 * H)   # sigmoid(4H) + tanh(g) + tanh(c), 2 layers
    bytes_accessed = (4 * (x_proj.size + 2 * state_in.size + T * Bp * C_PAD)
                      + 2 * (3 * H * G + H * C_PAD) + 4 * (G + C_PAD))

    logits_pad, state_out = pl.pallas_call(
        _digit_lstm_kernel,
        out_shape=(
            jax.ShapeDtypeStruct((T * Bp, C_PAD), jnp.float32),
            jax.ShapeDtypeStruct((2 * NUM_LAYERS, Bp, H), jnp.float32),
        ),
        grid_spec=pltpu.PrefetchScalarGridSpec(
            num_scalar_prefetch=0,
            grid=(1,),                                           # whole sequence in one step
            in_specs=[
                pl.BlockSpec((T * Bp, G), lambda i: (0, 0)),             # layer-0 preact slab
                pl.BlockSpec((2 * NUM_LAYERS, Bp, H), lambda i: (0, 0, 0)),  # packed state
                pl.BlockSpec((H, G), lambda i: (0, 0)),                  # W_hh0 (bf16)
                pl.BlockSpec((H, G), lambda i: (0, 0)),                  # W_ih1 (bf16)
                pl.BlockSpec((H, G), lambda i: (0, 0)),                  # W_hh1 (bf16)
                pl.BlockSpec((1, G), lambda i: (0, 0)),                  # bias layer 1
                pl.BlockSpec((H, C_PAD), lambda i: (0, 0)),              # fc weight (padded)
                pl.BlockSpec((1, C_PAD), lambda i: (0, 0)),              # fc bias  (padded)
            ],
            out_specs=(
                pl.BlockSpec((T * Bp, C_PAD), lambda i: (0, 0)),         # lane-dense logits
                pl.BlockSpec((2 * NUM_LAYERS, Bp, H), lambda i: (0, 0, 0)),  # final state
            ),
            scratch_shapes=[pltpu.VMEM((T * Bp, H), jnp.float32)],       # h1 slab for FC
        ),
        compiler_params=pltpu.CompilerParams(
            dimension_semantics=("arbitrary",)),
        cost_estimate=pl.CostEstimate(flops=flops,
                                      transcendentals=transcendentals,
                                      bytes_accessed=bytes_accessed),
        input_output_aliases={1: 1},                 # state slab updated in place
    )(x_proj, state_in,
      prep["w_hh0"], prep["w_ih1"], prep["w_hh1"], prep["b1"],
      prep["w_fc_pad"], prep["b_fc_pad"])

    # unpack: slice off batch / class padding; mirrors torch's reshape(B, -1)
    logits = logits_pad.reshape(T, Bp, C_PAD)[:, :B, :C]         # (T, B, C)
    out = jnp.transpose(logits, (1, 0, 2)).reshape(B, -1)
    h_new = state_out[:NUM_LAYERS, :B, :]
    c_new = state_out[NUM_LAYERS:, :B, :]
    return out, h_new, c_new


# --------------------------------------------------------------------------- #
# Pure-JAX f32 reference of the torch semantics (correctness check only).
# --------------------------------------------------------------------------- #
def _reference_step(x_emb, hidden, cell, params):
    H = HIDDEN

    def cell_fn(x_in, h, c, wih, whh, bih, bhh):
        gates = x_in @ wih.T + bih + h @ whh.T + bhh
        i = jax.nn.sigmoid(gates[:, 0 * H:1 * H])
        f = jax.nn.sigmoid(gates[:, 1 * H:2 * H])
        g = jnp.tanh(gates[:, 2 * H:3 * H])
        o = jax.nn.sigmoid(gates[:, 3 * H:4 * H])
        c_new = f * c + i * g
        return o * jnp.tanh(c_new), c_new

    h0, c0 = cell_fn(x_emb, hidden[0], cell[0], params["w_ih0"], params["w_hh0"],
                     params["b_ih0"], params["b_hh0"])
    h1, c1 = cell_fn(h0, hidden[1], cell[1], params["w_ih1"], params["w_hh1"],
                     params["b_ih1"], params["b_hh1"])
    out = h1 @ params["w_fc"].T + params["b_fc"]
    return out, jnp.stack([h0, h1]), jnp.stack([c0, c1])


def _reference_forward(x_idx, hidden, cell, params):
    x_seq = x_idx if x_idx.ndim == 2 else x_idx[:, None]
    B, T = x_seq.shape
    outs, h, c = [], hidden, cell
    for t in range(T):
        o, h, c = _reference_step(params["embedding"][x_seq[:, t]], h, c, params)
        outs.append(o)
    return jnp.stack(outs, axis=1).reshape(B, -1), h, c


def _init_params(key):
    ks = jax.random.split(key, 12)
    s = 0.1
    return {
        "embedding": s * jax.random.normal(ks[0], (NUM_CLASSES, EMBED_DIM), jnp.float32),
        "w_ih0": s * jax.random.normal(ks[1], (4 * HIDDEN, EMBED_DIM), jnp.float32),
        "w_hh0": s * jax.random.normal(ks[2], (4 * HIDDEN, HIDDEN), jnp.float32),
        "b_ih0": s * jax.random.normal(ks[3], (4 * HIDDEN,), jnp.float32),
        "b_hh0": s * jax.random.normal(ks[4], (4 * HIDDEN,), jnp.float32),
        "w_ih1": s * jax.random.normal(ks[5], (4 * HIDDEN, HIDDEN), jnp.float32),
        "w_hh1": s * jax.random.normal(ks[6], (4 * HIDDEN, HIDDEN), jnp.float32),
        "b_ih1": s * jax.random.normal(ks[7], (4 * HIDDEN,), jnp.float32),
        "b_hh1": s * jax.random.normal(ks[8], (4 * HIDDEN,), jnp.float32),
        "w_fc": s * jax.random.normal(ks[9], (NUM_CLASSES, HIDDEN), jnp.float32),
        "b_fc": s * jax.random.normal(ks[10], (NUM_CLASSES,), jnp.float32),
    }


if __name__ == "__main__":
    key = jax.random.PRNGKey(0)
    kp, kx, kc, kx2 = jax.random.split(key, 4)
    params = _init_params(kp)
    prep = prepare_params(params)          # one-time layout / bf16 / projection prep

    hidden = jnp.zeros((NUM_LAYERS, BATCH, HIDDEN), jnp.float32)
    # init_hidden builds `cell` from image features + one-hot entity unit on host;
    # we use a deterministic dense stand-in of the same shape.
    # TODO(synk): host-side entity_unit_map one-hot construction has no kernel equivalent.
    cell = 0.1 * jax.random.normal(kc, (NUM_LAYERS, BATCH, HIDDEN), jnp.float32)

    # exact DigitLSTM.forward semantics: one token per batch element (seq_len=1)
    x_idx = jax.random.randint(kx, (BATCH,), 0, NUM_CLASSES, dtype=jnp.int32)
    out, h_new, c_new = digit_lstm_forward(x_idx, hidden, cell, prep)
    jax.block_until_ready((out, h_new, c_new))

    ro, rh, rc = _reference_forward(x_idx, hidden, cell, params)
    # bf16 MXU operands (f32 accumulate) -> relaxed tolerance vs the f32 reference
    np.testing.assert_allclose(np.asarray(out), np.asarray(ro), atol=1e-2, rtol=1e-2)
    np.testing.assert_allclose(np.asarray(h_new), np.asarray(rh), atol=1e-2, rtol=1e-2)
    np.testing.assert_allclose(np.asarray(c_new), np.asarray(rc), atol=1e-2, rtol=1e-2)

    # amortized multi-step decode: T timesteps inside a single kernel launch
    T = 8
    x_seq = jax.random.randint(kx2, (BATCH, T), 0, NUM_CLASSES, dtype=jnp.int32)
    out_s, h_s, c_s = digit_lstm_forward(x_seq, hidden, cell, prep)
    jax.block_until_ready((out_s, h_s, c_s))

    ro_s, rh_s, rc_s = _reference_forward(x_seq, hidden, cell, params)
    np.testing.assert_allclose(np.asarray(out_s), np.asarray(ro_s), atol=1e-2, rtol=1e-2)
    np.testing.assert_allclose(np.asarray(h_s), np.asarray(rh_s), atol=1e-2, rtol=1e-2)
    np.testing.assert_allclose(np.asarray(c_s), np.asarray(rc_s), atol=1e-2, rtol=1e-2)

    print("KERNEL_OK")
</pallas_src>

<mosaic_0001>
module attributes {stable_mosaic.version = 11 : i64} {
  func.func @_digit_lstm_kernel(%arg0: i32, %arg1: memref<8x128xf32, #tpu.memory_space<vmem>>, %arg2: memref<4x8x32xf32, #tpu.memory_space<vmem>>, %arg3: memref<32x128xbf16, #tpu.memory_space<vmem>>, %arg4: memref<32x128xbf16, #tpu.memory_space<vmem>>, %arg5: memref<32x128xbf16, #tpu.memory_space<vmem>>, %arg6: memref<1x128xf32, #tpu.memory_space<vmem>>, %arg7: memref<32x128xbf16, #tpu.memory_space<vmem>>, %arg8: memref<1x128xf32, #tpu.memory_space<vmem>>, %arg9: memref<8x128xf32, #tpu.memory_space<vmem>>, %arg10: memref<4x8x32xf32, #tpu.memory_space<vmem>>, %arg11: memref<8x32xf32, #tpu.memory_space<vmem>>) attributes {dimension_semantics = [#tpu.dimension_semantics<arbitrary>], iteration_bounds = array<i64: 1>, scalar_prefetch = 0 : i64, scratch_operands = 1 : i64, tpu.core_type = #tpu.core_type<tc>, window_params = [{pipeline_mode = #tpu.pipeline_mode<synchronous>, transform_indices = @transform_0, window_bounds = array<i64: 8, 128>}, {pipeline_mode = #tpu.pipeline_mode<synchronous>, transform_indices = @transform_1, window_bounds = array<i64: 4, 8, 32>}, {pipeline_mode = #tpu.pipeline_mode<synchronous>, transform_indices = @transform_2, window_bounds = array<i64: 32, 128>}, {pipeline_mode = #tpu.pipeline_mode<synchronous>, transform_indices = @transform_3, window_bounds = array<i64: 32, 128>}, {pipeline_mode = #tpu.pipeline_mode<synchronous>, transform_indices = @transform_4, window_bounds = array<i64: 32, 128>}, {pipeline_mode = #tpu.pipeline_mode<synchronous>, transform_indices = @transform_5, window_bounds = array<i64: 1, 128>}, {pipeline_mode = #tpu.pipeline_mode<synchronous>, transform_indices = @transform_6, window_bounds = array<i64: 32, 128>}, {pipeline_mode = #tpu.pipeline_mode<synchronous>, transform_indices = @transform_7, window_bounds = array<i64: 1, 128>}, {pipeline_mode = #tpu.pipeline_mode<synchronous>, transform_indices = @transform_8, window_bounds = array<i64: 8, 128>}, {pipeline_mode = #tpu.pipeline_mode<synchronous>, transform_indices = @transform_9, window_bounds = array<i64: 4, 8, 32>}]} {
    %c0 = arith.constant 0 : index
    %c0_0 = arith.constant 0 : index
    %0 = vector.load %arg3[%c0, %c0_0] : memref<32x128xbf16, #tpu.memory_space<vmem>>, vector<32x128xbf16>
    %c0_1 = arith.constant 0 : index
    %c0_2 = arith.constant 0 : index
    %1 = vector.load %arg4[%c0_1, %c0_2] : memref<32x128xbf16, #tpu.memory_space<vmem>>, vector<32x128xbf16>
    %c0_3 = arith.constant 0 : index
    %c0_4 = arith.constant 0 : index
    %2 = vector.load %arg5[%c0_3, %c0_4] : memref<32x128xbf16, #tpu.memory_space<vmem>>, vector<32x128xbf16>
    %c0_5 = arith.constant 0 : index
    %c0_6 = arith.constant 0 : index
    %3 = vector.load %arg6[%c0_5, %c0_6] : memref<1x128xf32, #tpu.memory_space<vmem>>, vector<1x128xf32>
    %4 = vector.shape_cast %3 : vector<1x128xf32> to vector<1x128xf32>
    %5 = vector.broadcast %4 : vector<1x128xf32> to vector<8x128xf32>
    %c0_7 = arith.constant 0 : index
    %c0_8 = arith.constant 0 : index
    %c0_9 = arith.constant 0 : index
    %6 = vector.load %arg2[%c0_7, %c0_8, %c0_9] : memref<4x8x32xf32, #tpu.memory_space<vmem>>, vector<1x8x32xf32>
    %7 = vector.shape_cast %6 : vector<1x8x32xf32> to vector<8x32xf32>
    %c1 = arith.constant 1 : index
    %c0_10 = arith.constant 0 : index
    %c0_11 = arith.constant 0 : index
    %8 = vector.load %arg2[%c1, %c0_10, %c0_11] : memref<4x8x32xf32, #tpu.memory_space<vmem>>, vector<1x8x32xf32>
    %9 = vector.shape_cast %8 : vector<1x8x32xf32> to vector<8x32xf32>
    %c2 = arith.constant 2 : index
    %c0_12 = arith.constant 0 : index
    %c0_13 = arith.constant 0 : index
    %10 = vector.load %arg2[%c2, %c0_12, %c0_13] : memref<4x8x32xf32, #tpu.memory_space<vmem>>, vector<1x8x32xf32>
    %11 = vector.shape_cast %10 : vector<1x8x32xf32> to vector<8x32xf32>
    %c3 = arith.constant 3 : index
    %c0_14 = arith.constant 0 : index
    %c0_15 = arith.constant 0 : index
    %12 = vector.load %arg2[%c3, %c0_14, %c0_15] : memref<4x8x32xf32, #tpu.memory_space<vmem>>, vector<1x8x32xf32>
    %13 = vector.shape_cast %12 : vector<1x8x32xf32> to vector<8x32xf32>
    %c0_i32 = arith.constant 0 : i32
    %c8_i32 = arith.constant 8 : i32
    %14 = arith.muli %c0_i32, %c8_i32 : i32
    %15 = tpu.assume_multiple %14, 8 : i32
    %16 = arith.index_cast %15 : i32 to index
    %c0_16 = arith.constant 0 : index
    %17 = vector.load %arg1[%16, %c0_16] : memref<8x128xf32, #tpu.memory_space<vmem>>, vector<8x128xf32>
    %18 = arith.truncf %7 : vector<8x32xf32> to vector<8x32xbf16>
    %cst = arith.constant dense<0.000000e+00> : vector<8x128xf32>
    %19 = tpu.matmul %18, %0, %cst {dimension_numbers = #tpu.dot_dimension_numbers<[1], [0], [0], [1], [0, 0, 1, 1], [], []>} : vector<8x32xbf16>, vector<32x128xbf16>, vector<8x128xf32> -> vector<8x128xf32>
    %20 = arith.addf %17, %19 : vector<8x128xf32>
    %21 = arith.negf %20 : vector<8x128xf32>
    %22 = math.exp %21 : vector<8x128xf32>
    %cst_17 = arith.constant 1.000000e+00 : f32
    %23 = vector.broadcast %cst_17 : f32 to vector<8x128xf32>
    %24 = arith.addf %23, %22 : vector<8x128xf32>
    %25 = arith.divf %23, %24 : vector<8x128xf32>
    %26 = vector.extract_strided_slice %20 {offsets = [0, 64], sizes = [8, 32], strides = [1, 1]} : vector<8x128xf32> to vector<8x32xf32>
    %27 = math.tanh %26 : vector<8x32xf32>
    %28 = vector.extract_strided_slice %25 {offsets = [0, 32], sizes = [8, 32], strides = [1, 1]} : vector<8x128xf32> to vector<8x32xf32>
    %29 = arith.mulf %28, %11 : vector<8x32xf32>
    %30 = vector.extract_strided_slice %25 {offsets = [0, 0], sizes = [8, 32], strides = [1, 1]} : vector<8x128xf32> to vector<8x32xf32>
    %31 = arith.mulf %30, %27 : vector<8x32xf32>
    %32 = arith.addf %29, %31 : vector<8x32xf32>
    %33 = vector.extract_strided_slice %25 {offsets = [0, 96], sizes = [8, 32], strides = [1, 1]} : vector<8x128xf32> to vector<8x32xf32>
    %34 = math.tanh %32 : vector<8x32xf32>
    %35 = arith.mulf %33, %34 : vector<8x32xf32>
    %36 = arith.truncf %35 : vector<8x32xf32> to vector<8x32xbf16>
    %cst_18 = arith.constant dense<0.000000e+00> : vector<8x128xf32>
    %37 = tpu.matmul %36, %1, %cst_18 {dimension_numbers = #tpu.dot_dimension_numbers<[1], [0], [0], [1], [0, 0, 1, 1], [], []>} : vector<8x32xbf16>, vector<32x128xbf16>, vector<8x128xf32> -> vector<8x128xf32>
    %38 = arith.truncf %9 : vector<8x32xf32> to vector<8x32xbf16>
    %cst_19 = arith.constant dense<0.000000e+00> : vector<8x128xf32>
    %39 = tpu.matmul %38, %2, %cst_19 {dimension_numbers = #tpu.dot_dimension_numbers<[1], [0], [0], [1], [0, 0, 1, 1], [], []>} : vector<8x32xbf16>, vector<32x128xbf16>, vector<8x128xf32> -> vector<8x128xf32>
    %40 = arith.addf %37, %39 : vector<8x128xf32>
    %41 = arith.addf %40, %5 : vector<8x128xf32>
    %42 = arith.negf %41 : vector<8x128xf32>
    %43 = math.exp %42 : vector<8x128xf32>
    %cst_20 = arith.constant 1.000000e+00 : f32
    %44 = vector.broadcast %cst_20 : f32 to vector<8x128xf32>
    %45 = arith.addf %44, %43 : vector<8x128xf32>
    %46 = arith.divf %44, %45 : vector<8x128xf32>
    %47 = vector.extract_strided_slice %41 {offsets = [0, 64], sizes = [8, 32], strides = [1, 1]} : vector<8x128xf32> to vector<8x32xf32>
    %48 = math.tanh %47 : vector<8x32xf32>
    %49 = vector.extract_strided_slice %46 {offsets = [0, 32], sizes = [8, 32], strides = [1, 1]} : vector<8x128xf32> to vector<8x32xf32>
    %50 = arith.mulf %49, %13 : vector<8x32xf32>
    %51 = vector.extract_strided_slice %46 {offsets = [0, 0], sizes = [8, 32], strides = [1, 1]} : vector<8x128xf32> to vector<8x32xf32>
    %52 = arith.mulf %51, %48 : vector<8x32xf32>
    %53 = arith.addf %50, %52 : vector<8x32xf32>
    %54 = vector.extract_strided_slice %46 {offsets = [0, 96], sizes = [8, 32], strides = [1, 1]} : vector<8x128xf32> to vector<8x32xf32>
    %55 = math.tanh %53 : vector<8x32xf32>
    %56 = arith.mulf %54, %55 : vector<8x32xf32>
    %57 = arith.index_cast %15 : i32 to index
    %c0_21 = arith.constant 0 : index
    %58 = vector.load %arg11[%57, %c0_21] : memref<8x32xf32, #tpu.memory_space<vmem>>, vector<8x32xf32>
    tpu.vector_store %arg11[%57, %c0_21], %56 {strides = array<i32>} : memref<8x32xf32, #tpu.memory_space<vmem>>, vector<8x32xf32>,
    %c1_i32 = arith.constant 1 : i32
    %c0_22 = arith.constant 0 : index
    %c0_23 = arith.constant 0 : index
    %c0_24 = arith.constant 0 : index
    %59 = vector.load %arg10[%c0_22, %c0_23, %c0_24] : memref<4x8x32xf32, #tpu.memory_space<vmem>>, vector<1x8x32xf32>
    %60 = vector.shape_cast %59 : vector<1x8x32xf32> to vector<8x32xf32>
    %61 = vector.shape_cast %35 : vector<8x32xf32> to vector<1x8x32xf32>
    tpu.vector_store %arg10[%c0_22, %c0_23, %c0_24], %61 {strides = array<i32>} : memref<4x8x32xf32, #tpu.memory_space<vmem>>, vector<1x8x32xf32>,
    %c1_25 = arith.constant 1 : index
    %c0_26 = arith.constant 0 : index
    %c0_27 = arith.constant 0 : index
    %62 = vector.load %arg10[%c1_25, %c0_26, %c0_27] : memref<4x8x32xf32, #tpu.memory_space<vmem>>, vector<1x8x32xf32>
    %63 = vector.shape_cast %62 : vector<1x8x32xf32> to vector<8x32xf32>
    %64 = vector.shape_cast %56 : vector<8x32xf32> to vector<1x8x32xf32>
    tpu.vector_store %arg10[%c1_25, %c0_26, %c0_27], %64 {strides = array<i32>} : memref<4x8x32xf32, #tpu.memory_space<vmem>>, vector<1x8x32xf32>,
    %c2_28 = arith.constant 2 : index
    %c0_29 = arith.constant 0 : index
    %c0_30 = arith.constant 0 : index
    %65 = vector.load %arg10[%c2_28, %c0_29, %c0_30] : memref<4x8x32xf32, #tpu.memory_space<vmem>>, vector<1x8x32xf32>
    %66 = vector.shape_cast %65 : vector<1x8x32xf32> to vector<8x32xf32>
    %67 = vector.shape_cast %32 : vector<8x32xf32> to vector<1x8x32xf32>
    tpu.vector_store %arg10[%c2_28, %c0_29, %c0_30], %67 {strides = array<i32>} : memref<4x8x32xf32, #tpu.memory_space<vmem>>, vector<1x8x32xf32>,
    %c3_31 = arith.constant 3 : index
    %c0_32 = arith.constant 0 : index
    %c0_33 = arith.constant 0 : index
    %68 = vector.load %arg10[%c3_31, %c0_32, %c0_33] : memref<4x8x32xf32, #tpu.memory_space<vmem>>, vector<1x8x32xf32>
    %69 = vector.shape_cast %68 : vector<1x8x32xf32> to vector<8x32xf32>
    %70 = vector.shape_cast %53 : vector<8x32xf32> to vector<1x8x32xf32>
    tpu.vector_store %arg10[%c3_31, %c0_32, %c0_33], %70 {strides = array<i32>} : memref<4x8x32xf32, #tpu.memory_space<vmem>>, vector<1x8x32xf32>,
    %c0_34 = arith.constant 0 : index
    %c0_35 = arith.constant 0 : index
    %71 = vector.load %arg11[%c0_34, %c0_35] : memref<8x32xf32, #tpu.memory_space<vmem>>, vector<8x32xf32>
    %72 = arith.truncf %71 : vector<8x32xf32> to vector<8x32xbf16>
    %c0_36 = arith.constant 0 : index
    %c0_37 = arith.constant 0 : index
    %73 = vector.load %arg7[%c0_36, %c0_37] : memref<32x128xbf16, #tpu.memory_space<vmem>>, vector<32x128xbf16>
    %cst_38 = arith.constant dense<0.000000e+00> : vector<8x128xf32>
    %74 = tpu.matmul %72, %73, %cst_38 {dimension_numbers = #tpu.dot_dimension_numbers<[1], [0], [0], [1], [0, 0, 1, 1], [], []>} : vector<8x32xbf16>, vector<32x128xbf16>, vector<8x128xf32> -> vector<8x128xf32>
    %c0_39 = arith.constant 0 : index
    %c0_40 = arith.constant 0 : index
    %75 = vector.load %arg8[%c0_39, %c0_40] : memref<1x128xf32, #tpu.memory_space<vmem>>, vector<1x128xf32>
    %76 = vector.broadcast %75 : vector<1x128xf32> to vector<8x128xf32>
    %77 = arith.addf %74, %76 : vector<8x128xf32>
    %c0_41 = arith.constant 0 : index
    %c0_42 = arith.constant 0 : index
    %78 = vector.load %arg9[%c0_41, %c0_42] : memref<8x128xf32, #tpu.memory_space<vmem>>, vector<8x128xf32>
    tpu.vector_store %arg9[%c0_41, %c0_42], %77 {strides = array<i32>} : memref<8x128xf32, #tpu.memory_space<vmem>>, vector<8x128xf32>,
    return
  }
  func.func @transform_0(%arg0: i32) -> (i32, i32) {
    %c0_i32 = arith.constant 0 : i32
    %c0_i32_0 = arith.constant 0 : i32
    %c0_i32_1 = arith.constant 0 : i32
    return %c0_i32, %c0_i32_0 : i32, i32
  }
  func.func @transform_1(%arg0: i32) -> (i32, i32, i32) {
    %c0_i32 = arith.constant 0 : i32
    %c0_i32_0 = arith.constant 0 : i32
    %c0_i32_1 = arith.constant 0 : i32
    %c0_i32_2 = arith.constant 0 : i32
    return %c0_i32, %c0_i32_0, %c0_i32_1 : i32, i32, i32
  }
  func.func @transform_2(%arg0: i32) -> (i32, i32) {
    %c0_i32 = arith.constant 0 : i32
    %c0_i32_0 = arith.constant 0 : i32
    %c0_i32_1 = arith.constant 0 : i32
    return %c0_i32, %c0_i32_0 : i32, i32
  }
  func.func @transform_3(%arg0: i32) -> (i32, i32) {
    %c0_i32 = arith.constant 0 : i32
    %c0_i32_0 = arith.constant 0 : i32
    %c0_i32_1 = arith.constant 0 : i32
    return %c0_i32, %c0_i32_0 : i32, i32
  }
  func.func @transform_4(%arg0: i32) -> (i32, i32) {
    %c0_i32 = arith.constant 0 : i32
    %c0_i32_0 = arith.constant 0 : i32
    %c0_i32_1 = arith.constant 0 : i32
    return %c0_i32, %c0_i32_0 : i32, i32
  }
  func.func @transform_5(%arg0: i32) -> (i32, i32) {
    %c0_i32 = arith.constant 0 : i32
    %c0_i32_0 = arith.constant 0 : i32
    %c0_i32_1 = arith.constant 0 : i32
    return %c0_i32, %c0_i32_0 : i32, i32
  }
  func.func @transform_6(%arg0: i32) -> (i32, i32) {
    %c0_i32 = arith.constant 0 : i32
    %c0_i32_0 = arith.constant 0 : i32
    %c0_i32_1 = arith.constant 0 : i32
    return %c0_i32, %c0_i32_0 : i32, i32
  }
  func.func @transform_7(%arg0: i32) -> (i32, i32) {
    %c0_i32 = arith.constant 0 : i32
    %c0_i32_0 = arith.constant 0 : i32
    %c0_i32_1 = arith.constant 0 : i32
    return %c0_i32, %c0_i32_0 : i32, i32
  }
  func.func @transform_8(%arg0: i32) -> (i32, i32) {
    %c0_i32 = arith.constant 0 : i32
    %c0_i32_0 = arith.constant 0 : i32
    %c0_i32_1 = arith.constant 0 : i32
    return %c0_i32, %c0_i32_0 : i32, i32
  }
  func.func @transform_9(%arg0: i32) -> (i32, i32, i32) {
    %c0_i32 = arith.constant 0 : i32
    %c0_i32_0 = arith.constant 0 : i32
    %c0_i32_1 = arith.constant 0 : i32
    %c0_i32_2 = arith.constant 0 : i32
    return %c0_i32, %c0_i32_0, %c0_i32_1 : i32, i32, i32
  }
}

</mosaic_0001>

<bundles_post_ra>
// kernel: digit_lstm_forward.1
= control target key start
LH: loop header
LB: loop body
LE: loop exit
PB: predicated region body
PF: predicated region fallthrough
CT: control target
= control target key end

     0   :  { %v485_v0 = vmov 0.0   ;;  %vm486_vm0 = vmmov 0   ;;  %vm72_vm1 = vcmask 261120   ;;  %s488_s19 = smov 32   ;;  %s640_s2 = inlined_call_operand.vmem [shape: bf16[32,128], index: 2, kind: input, shape index: {}]   ;;  %s641_s1 = inlined_call_operand.vmem [shape: f32[4,8,32], index: 1, kind: input, shape index: {}, may-alias: {1,9}]   ;;  %s642_s0 = inlined_call_operand.vmem [shape: f32[8,128], index: 0, kind: input, shape index: {}]   ;;  %s643_s4 = inlined_call_operand.vmem [shape: bf16[32,128], index: 4, kind: input, shape index: {}]   ;;  %s644_s3 = inlined_call_operand.vmem [shape: bf16[32,128], index: 3, kind: input, shape index: {}]   ;;  %s645_s5 = inlined_call_operand.vmem [shape: f32[1,128], index: 5, kind: input, shape index: {}]   ;;  %s646_s6 = inlined_call_operand.vmem [shape: bf16[32,128], index: 6, kind: input, shape index: {}]   ;;  %s647_s9 = inlined_call_operand.vmem [shape: f32[4,8,32], index: 9, kind: output, shape index: {1}, may-alias: {1,9}]   ;;  %s648_s7 = inlined_call_operand.vmem [shape: f32[1,128], index: 7, kind: input, shape index: {}]   ;;  %s649_s8 = inlined_call_operand.vmem [shape: f32[8,128], index: 8, kind: output, shape index: {0}]  }
   0x1   :  { %424 = vmatprep.subr.bf16.mxu0 %v485_v0  ;;  %v461_v1 = vld [vmem:[%s640_s2 + $0x8] sm:$0xff]   ;;  %428 = vmatprep.mubr.msk.bf16.mxu0 %vm486_vm0, %v485_v0  ;;  %v462_v2 = vld [vmem:[%s640_s2] sm:$0xff]   ;;  %s487_s2 = smov 64   ;;  %v392_v12 = vld [vmem:[%s641_s1 + $0x10] sm:$0xff] }
   0x2   :  { %432 = vmatprep.subr.bf16.mxu1 %v485_v0  ;;  %436 = vmatprep.mubr.msk.bf16.mxu1 %vm486_vm0, %v485_v0  ;;  %v51_v3 = vld [vmem:[%s641_s1] sm:$0xff]  ;;  %v463_v23 = vld [vmem:[%s643_s4 + $0x8] sm:$0xff]   ;;  %v393_v33 = vld [vmem:[%s641_s1 + $0x18] sm:$0xff] }
   0x3   :  { %425 = vmatpush3.bf16.msra.mxu0 %v461_v1  ;;  %v59_v4 = vpack.c.bf16 %v51_v3, %v51_v3  ;;  %v58_v5 = vld [vmem:[%s642_s0] sm:$0xff]  ;;  %v391_v24 = vld [vmem:[%s641_s1 + $0x8] sm:$0xff]  ;;  %433 = vmatpush3.bf16.msra.mxu1 %v463_v23  ;;  %s489_s1 = smov 96  }
   0x4   :  { %426 = vmatprep.subr.bf16.mxu0 %v485_v0  ;;  %v464_v25 = vld [vmem:[%s643_s4] sm:$0xff]   ;;  %v465_v26 = vld [vmem:[%s644_s3 + $0x8] sm:$0xff]   ;;  %434 = vmatprep.subr.bf16.mxu1 %v485_v0  ;;  %v146_v28 = vpack.c.bf16 %v391_v24, %v391_v24 }
   0x5   :  { %v466_v27 = vld [vmem:[%s644_s3] sm:$0xff]   ;;  %v467_v58 = vld [vmem:[%s646_s6 + $0x8] sm:$0xff]  }
   0x6   :  { %v390_v39 = vld [vmem:[%s645_s5] ss:$0 sm:$0xff] }
   0x7   :  { %427 = vmatpush3.bf16.msra.mxu0 %v462_v2  ;;  %435 = vmatpush3.bf16.msra.mxu1 %v464_v25  ;;  %v468_v59 = vld [vmem:[%s646_s6] sm:$0xff]  }
   0x8   :  { %440 = vmatprep.subr.bf16.mxu0 %v485_v0  ;;  %448 = vmatprep.subr.bf16.mxu1 %v485_v0 }
   0xa   :  { %429 = vmatmul.mubr.msk.bf16.vlgmr.msra.gmra.mxu0 %vm72_vm1, %v59_v4  ;;  %437 = vmatmul.mubr.msk.bf16.vlgmr.msra.gmra.mxu1 %vm72_vm1, %v146_v28  ;;  %v408_v4 = vld [vmem:[%s648_s7] ss:$0 sm:$0xff] }
   0xb   :  { %444 = vmatprep.mubr.msk.bf16.mxu0 %vm486_vm0, %v485_v0  ;;  %441 = vmatpush3.bf16.msra.mxu0 %v465_v26 }
   0xc   :  { %442 = vmatprep.subr.bf16.mxu0 %v485_v0  ;;  %452 = vmatprep.mubr.msk.bf16.mxu1 %vm486_vm0, %v485_v0 }
   0xd   :  { %449 = vmatpush3.bf16.msra.mxu1 %v467_v58 }
   0xe   :  { %450 = vmatprep.subr.bf16.mxu1 %v485_v0 }
   0xf   :  { %443 = vmatpush3.bf16.msra.mxu0 %v466_v27 }
  0x11   :  { %451 = vmatpush3.bf16.msra.mxu1 %v468_v59 }
  0xca   :  { %v110_v6 = vpop.f32.mrf.mxu0  ;;  %v196_v34 = vpop.f32.mrf.mxu1 }
  0xcb   :  { %v116_v7 = vadd.f32 %v110_v6, %v58_v5 }
  0xcc   :  { %v430_v8 = vpop.f32.mrf.mxu0  ;;  %v438_v35 = vpop.f32.mrf.mxu1 }
  0xcd   :  { %469 = vtanh.f32 %v116_v7  ;;  %v397_v13 = vmul.f32 -1.442695, %v116_v7 }
  0xce   :  { %v113_v9 = vpop.f32.mrf.mxu0  ;;  %v199_v36 = vpop.f32.mrf.mxu1 }
  0xcf   :  { %471 = vpow2.f32 %v397_v13 }
  0xd0   :  { %v431_v10 = vpop.f32.mrf.mxu0  ;;  %v439_v37 = vpop.f32.mrf.mxu1 }
  0xda   :  { %v470_v11 = vpop.eup %469 }
  0xdb   :  { %130 = vrot.lane.b32.xlu0 %v470_v11, %s487_s2 }
  0xdc   :  { %v472_v14 = vpop.eup %471 }
  0xdd   :  { %v120_v15 = vadd.f32 1.0, %v472_v14 }
  0xdf   :  { %125 = vrot.lane.b32.xlu0 %v392_v12, %s488_s19  ;;  %473 = vrcp.f32 %v120_v15 }
  0xec   :  { %v474_v16 = vpop.eup %473 }
 0x14d   :  { %v131_v17 = vpop.permute.xlu0 %130 }
 0x14e   :  { %v133_v18 = vmul.f32 %v474_v16, %v131_v17 }
 0x150   :  { %135 = vrot.lane.b32.xlu1 %v133_v18, %s488_s19 }
 0x151   :  { %v126_v19 = vpop.permute.xlu0 %125 }
 0x152   :  { %v128_v20 = vmul.f32 %v474_v16, %v126_v19 }
 0x1c2   :  { %v136_v21 = vpop.permute.xlu1 %135 }
 0x1c3   :  { %v569_v22 = vadd.f32 %v136_v21, %v128_v20 }
 0x1c5   :  { %475 = vtanh.f32 %v569_v22 }
 0x1d2   :  { %v476_v29 = vpop.eup %475 }
 0x1d3   :  { %141 = vrot.lane.b32.xlu1 %v476_v29, %s487_s2 }
 0x245   :  { %v142_v30 = vpop.permute.xlu1 %141 }
 0x246   :  { %v144_v31 = vmul.f32 %v474_v16, %v142_v30 }
 0x248   :  { %v145_v32 = vpack.c.bf16 %v144_v31, %v144_v31 }
 0x24a   :  { %203 = vrot.lane.b32.xlu0 %v145_v32, %s488_s19 }
 0x24e   :  { %269 = vrot.lane.b32.xlu0 %v393_v33, %s488_s19 }
 0x2bc   :  { %v204_v38 = vpop.permute.xlu0 %203 }
 0x2bd   :  { %445 = vmatmul.mubr.msk.bf16.vlgmr.msra.gmra.mxu0 %vm72_vm1, %v204_v38 }
 0x2c0   :  { %v270_v53 = vpop.permute.xlu0 %269 }
 0x37d   :  { %v254_v40 = vpop.f32.mrf.mxu0 }
 0x37e   :  { %v255_v41 = vadd.f32 %v254_v40, %v196_v34 }
 0x37f   :  { %v446_v42 = vpop.f32.mrf.mxu0 }
 0x380   :  { %v260_v43 = vadd.f32 %v390_v39, %v255_v41 }
 0x381   :  { %v257_v44 = vpop.f32.mrf.mxu0 }
 0x382   :  { %477 = vtanh.f32 %v260_v43  ;;  %v404_v47 = vmul.f32 -1.442695, %v260_v43 }
 0x383   :  { %v447_v45 = vpop.f32.mrf.mxu0 }
 0x384   :  { %479 = vpow2.f32 %v404_v47 }
 0x38f   :  { %v478_v46 = vpop.eup %477 }
 0x390   :  { %274 = vrot.lane.b32.xlu1 %v478_v46, %s487_s2 }
 0x391   :  { %v480_v48 = vpop.eup %479 }
 0x392   :  { %v264_v49 = vadd.f32 1.0, %v480_v48 }
 0x394   :  { %481 = vrcp.f32 %v264_v49 }
 0x3a1   :  { %v482_v50 = vpop.eup %481 }
 0x3a2   :  { %v272_v54 = vmul.f32 %v482_v50, %v270_v53 }
 0x402   :  { %v275_v51 = vpop.permute.xlu1 %274 }
 0x403   :  { %v277_v52 = vmul.f32 %v482_v50, %v275_v51 }
 0x405   :  { %279 = vrot.lane.b32.xlu1 %v277_v52, %s488_s19 }
 0x477   :  { %v280_v55 = vpop.permute.xlu1 %279 }
 0x478   :  { %v282_v56 = vadd.f32 %v280_v55, %v272_v54 }
 0x47a   :  { %483 = vtanh.f32 %v282_v56 }
 0x487   :  { %v484_v57 = vpop.eup %483 }
 0x488   :  { %285 = vrot.lane.b32.xlu0 %v484_v57, %s487_s2 }
 0x48c   :  { %295 = vrot.lane.b32.xlu0 %v144_v31, %s488_s19 }
 0x490   :  { %308 = vrot.lane.b32.xlu0 %v282_v56, %s489_s1 }
 0x4fa   :  { %v286_v60 = vpop.permute.xlu0 %285 }
 0x4fb   :  { %v288_v61 = vmul.f32 %v482_v50, %v286_v60 }
 0x4fd   :  { %290 = vrot.lane.b32.xlu1 %v288_v61, %s488_s19 }
 0x4fe   :  { %v296_v62 = vpop.permute.xlu0 %295 }
 0x4ff   :  { %298 = vst.msk [vmem:[%s647_s9] sm:$0xff] %vm72_vm1, %v296_v62 }
 0x501   :  { %302 = vrot.lane.b32.xlu1 %v569_v22, %s489_s1 }
 0x502   :  { %v309_v63 = vpop.permute.xlu0 %308 }
 0x503   :  { %407 = vst.msk [vmem:[%s647_s9 + $0x18] sm:$0xff] %vm72_vm1, %v309_v63 }
 0x56f   :  { %v291_v0 = vpop.permute.xlu1 %290 }
 0x570   :  { %293 = vst.msk [vmem:[#allocation2] sm:$0xff] %vm72_vm1, %v291_v0  ;;  %405 = vst.msk [vmem:[%s647_s9 + $0x8] sm:$0xff] %vm72_vm1, %v291_v0 }
 0x573   :  { %v303_v1 = vpop.permute.xlu1 %302 }
 0x574   :  { %406 = vst.msk [vmem:[%s647_s9 + $0x10] sm:$0xff] %vm72_vm1, %v303_v1 }
 0x577   :  { %v313_v2 = vld [vmem:[#allocation2] sm:$0xff] }
 0x578   :  { %v314_v3 = vpack.c.bf16 %v313_v2, %v313_v2 }
 0x57a   :  { %453 = vmatmul.mubr.msk.bf16.vlgmr.msra.gmra.mxu1 %vm72_vm1, %v314_v3 }
 0x63a   :  { %v375_v5 = vpop.f32.mrf.mxu1 }
 0x63b   :  { %v376_v6 = vadd.f32 %v408_v4, %v375_v5 }
 0x63c   :  { %v454_v7 = vpop.f32.mrf.mxu1 }
 0x63d   :  { %381 = vst [vmem:[%s649_s8] sm:$0xff] %v376_v6 }
 0x63e   :  { %v378_v8 = vpop.f32.mrf.mxu1 }
 0x640   :  { %v455_v9 = vpop.f32.mrf.mxu1 }

</bundles_post_ra>
